<compile_context>
chip_gen: v5e
topology: v5e:2x2
jax: 0.10.0
libtpu: 0.0.40
codegen_flags: <defaults>
</compile_context>

<pallas_src>
import functools

import jax
import jax.numpy as jnp
from jax import lax
from jax.experimental import pallas as pl
from jax.experimental.pallas import tpu as pltpu


def _round_up(x, m):
    return ((x + m - 1) // m) * m


def _vmem_estimate_bytes(p_pad, c, tile_s, itemsize):
    return (2 * p_pad * 128 * 4            # (P,1) int32 key, lane-padded, dbl-buffered
            + 2 * p_pad * c * itemsize     # pillar features, dbl-buffered
            + 2 * c * tile_s * itemsize    # output tile, dbl-buffered
            + 2 * p_pad * tile_s * 4)      # onehot / iota temporaries


def _choose_tile_s(s_total, p_pad, c, itemsize,
                   budget_bytes=20 * 1024 * 1024, max_tile=2048):
    """Largest lane tile (multiple of 128, capped) fitting a VMEM budget.

    Budget is conservative so the same choice stays inside v7x's 64 MiB
    physical / 32 MiB default-scoped VMEM as well as v5e/v6e.
    """
    fixed = 2 * p_pad * 128 * 4 + 2 * p_pad * c * itemsize
    per_lane = 2 * c * itemsize + 2 * p_pad * 4
    avail = max(budget_bytes - fixed, 0)
    ts = min(avail // per_lane, max_tile)
    if ts >= s_total:
        return s_total                      # full spatial extent in one tile
    ts = (ts // 128) * 128
    return int(max(ts, 128))


def _scatter_kernel(key_ref, feat_ref, out_ref, *, spatial_size):
    # key_ref:  (P, 1) int32, key = batch*S + flat  (-1 => ignore pillar)
    # feat_ref: (P, C) float
    # out_ref:  (C, TILE_S) float   -> output block for (batch b, spatial tile s)
    b = pl.program_id(0)
    s = pl.program_id(1)
    p = feat_ref.shape[0]
    tile_s = out_ref.shape[-1]

    base = b * spatial_size + s * tile_s
    target = base + lax.broadcasted_iota(jnp.int32, (p, tile_s), 1)   # (P, TILE_S)
    # Single VPU compare per element (batch mask + flat compare fused via key).
    onehot = (key_ref[...] == target).astype(feat_ref.dtype)          # (P, TILE_S)

    # Contract pillar axis on the MXU: (P, C) x (P, TILE_S) -> (C, TILE_S).
    out = lax.dot_general(
        feat_ref[...], onehot,
        dimension_numbers=(((0,), (0,)), ((), ())),
        preferred_element_type=jnp.float32,
    )
    out_ref[...] = out.astype(out_ref.dtype)


def pointpillar_scatter(pillar_features, voxel_coords, *, batch_size,
                        num_bev_features, grid_size):
    """JAX/Pallas equivalent of PointPillarScatter.forward.

    Args:
      pillar_features: (P, C) float array.
      voxel_coords:    (P, 4) int array, columns (batch_idx, z, y, x).
                       Rows with batch_idx outside [0, batch_size) are ignored
                       (use batch_idx = -1 for padded pillars).
      batch_size:      static int (PyTorch computes it from coords.max()+1).
      num_bev_features: C.
      grid_size:       (nx, ny, nz) with nz == 1.

    Returns:
      spatial_features: (batch_size, C*nz, ny, nx) array (NCHW).
    """
    nx, ny, nz = grid_size
    assert nz == 1
    P, C = pillar_features.shape
    assert C == num_bev_features
    S = nz * nx * ny

    # --- wrapper-side precompute: one packed key per pillar ------------------
    coords = voxel_coords.astype(jnp.int32)
    flat = coords[:, 1] + coords[:, 2] * nx + coords[:, 3]
    batch_idx = coords[:, 0]
    valid = (batch_idx >= 0) & (batch_idx < batch_size) & (flat >= 0) & (flat < S)
    key = jnp.where(valid, batch_idx * S + flat, -1).astype(jnp.int32)

    # Pad the pillar axis to a sublane multiple; padded rows never match.
    P_pad = _round_up(max(P, 8), 8)
    if P_pad != P:
        key = jnp.pad(key, (0, P_pad - P), constant_values=-1)
        pillar_features = jnp.pad(pillar_features, ((0, P_pad - P), (0, 0)))
    key = key[:, None]                                           # (P_pad, 1)

    itemsize = jnp.dtype(pillar_features.dtype).itemsize
    tile_s = _choose_tile_s(S, P_pad, C, itemsize)
    num_s_tiles = pl.cdiv(S, tile_s)

    vmem_est = _vmem_estimate_bytes(P_pad, C, tile_s, itemsize)
    vmem_limit = int(min(max(2 * vmem_est, 16 * 1024 * 1024), 48 * 1024 * 1024))

    kernel = functools.partial(_scatter_kernel, spatial_size=S)

    out_flat = pl.pallas_call(
        kernel,
        out_shape=jax.ShapeDtypeStruct((batch_size, C, S), pillar_features.dtype),
        grid_spec=pltpu.PrefetchScalarGridSpec(
            num_scalar_prefetch=0,
            grid=(batch_size, num_s_tiles),
            in_specs=[
                pl.BlockSpec((P_pad, 1), lambda b, s: (0, 0)),    # packed keys
                pl.BlockSpec((P_pad, C), lambda b, s: (0, 0)),    # pillar features
            ],
            out_specs=pl.BlockSpec((None, C, tile_s), lambda b, s: (b, 0, s)),
        ),
        compiler_params=pltpu.CompilerParams(
            dimension_semantics=("parallel", "parallel"),
            vmem_limit_bytes=vmem_limit,
        ),
    )(key, pillar_features)

    # Matches torch: view(batch_size, C*nz, ny, nx)
    return out_flat.reshape(batch_size, C * nz, ny, nx)


def _reference(pillar_features, voxel_coords, batch_size, C, nx, ny):
    S = nx * ny
    flat = voxel_coords[:, 1] + voxel_coords[:, 2] * nx + voxel_coords[:, 3]
    out = jnp.zeros((batch_size, C, S), pillar_features.dtype)
    out = out.at[voxel_coords[:, 0], :, flat].set(pillar_features)
    return out.reshape(batch_size, C, ny, nx)


if __name__ == "__main__":
    key = jax.random.PRNGKey(0)

    # Small, deterministic config.
    nx, ny, nz = 16, 16, 1
    grid_size = (nx, ny, nz)
    num_bev_features = 64
    batch_size = 2
    pillars_per_batch = 32
    P = batch_size * pillars_per_batch

    k_feat, k_perm0, k_perm1 = jax.random.split(key, 3)
    pillar_features = jax.random.normal(k_feat, (P, num_bev_features),
                                        dtype=jnp.float32)

    # Unique spatial locations per batch (mirrors real voxelization output).
    coords_list = []
    for b, k in enumerate((k_perm0, k_perm1)):
        sel = jax.random.permutation(k, nx * ny)[:pillars_per_batch]
        y = sel // nx
        x = sel % nx
        bcol = jnp.full((pillars_per_batch,), b, dtype=jnp.int32)
        zcol = jnp.zeros((pillars_per_batch,), dtype=jnp.int32)
        coords_list.append(
            jnp.stack([bcol, zcol, y.astype(jnp.int32), x.astype(jnp.int32)],
                      axis=1))
    voxel_coords = jnp.concatenate(coords_list, axis=0)  # (P, 4) int32

    # --- main check -----------------------------------------------------------
    spatial_features = pointpillar_scatter(
        pillar_features, voxel_coords,
        batch_size=batch_size,
        num_bev_features=num_bev_features,
        grid_size=grid_size,
    )
    spatial_features = jax.block_until_ready(spatial_features)

    ref = _reference(pillar_features, voxel_coords, batch_size,
                     num_bev_features, nx, ny)
    assert spatial_features.shape == (batch_size, num_bev_features, ny, nx)
    assert jnp.allclose(spatial_features, ref, atol=1e-5, rtol=1e-5)

    # --- second check: P not a multiple of 8 (exercises pillar padding) ------
    P2 = 50
    out2 = pointpillar_scatter(
        pillar_features[:P2], voxel_coords[:P2],
        batch_size=batch_size,
        num_bev_features=num_bev_features,
        grid_size=grid_size,
    )
    out2 = jax.block_until_ready(out2)
    ref2 = _reference(pillar_features[:P2], voxel_coords[:P2], batch_size,
                      num_bev_features, nx, ny)
    assert jnp.allclose(out2, ref2, atol=1e-5, rtol=1e-5)

    print("KERNEL_OK")
</pallas_src>

<mosaic_0001>
module attributes {stable_mosaic.version = 11 : i64} {
  func.func @_scatter_kernel(%arg0: i32, %arg1: i32, %arg2: memref<64x1xi32, #tpu.memory_space<vmem>>, %arg3: memref<64x64xf32, #tpu.memory_space<vmem>>, %arg4: memref<1x64x256xf32, #tpu.memory_space<vmem>>) attributes {dimension_semantics = [#tpu.dimension_semantics<parallel>, #tpu.dimension_semantics<parallel>], iteration_bounds = array<i64: 2, 1>, scalar_prefetch = 0 : i64, scratch_operands = 0 : i64, tpu.core_type = #tpu.core_type<tc>, window_params = [{pipeline_mode = #tpu.pipeline_mode<synchronous>, transform_indices = @transform_0, window_bounds = array<i64: 64, 1>}, {pipeline_mode = #tpu.pipeline_mode<synchronous>, transform_indices = @transform_1, window_bounds = array<i64: 64, 64>}, {transform_indices = @transform_2, window_bounds = array<i64: 1, 64, 256>}]} {
    %c256_i32 = arith.constant 256 : i32
    %0 = arith.muli %arg0, %c256_i32 : i32
    %c256_i32_0 = arith.constant 256 : i32
    %1 = arith.muli %arg1, %c256_i32_0 : i32
    %2 = arith.addi %0, %1 : i32
    %3 = tpu.iota {dimensions = array<i32: 1>} : vector<64x256xi32>
    %4 = vector.broadcast %2 : i32 to vector<64x256xi32>
    %5 = arith.addi %4, %3 : vector<64x256xi32>
    %c0 = arith.constant 0 : index
    %c0_1 = arith.constant 0 : index
    %6 = vector.load %arg2[%c0, %c0_1] : memref<64x1xi32, #tpu.memory_space<vmem>>, vector<64x1xi32>
    %7 = vector.broadcast %6 : vector<64x1xi32> to vector<64x256xi32>
    %8 = arith.cmpi eq, %7, %5 : vector<64x256xi32>
    %9 = arith.extui %8 : vector<64x256xi1> to vector<64x256xi32>
    %10 = arith.sitofp %9 : vector<64x256xi32> to vector<64x256xf32>
    %c0_2 = arith.constant 0 : index
    %c0_3 = arith.constant 0 : index
    %11 = vector.load %arg3[%c0_2, %c0_3] : memref<64x64xf32, #tpu.memory_space<vmem>>, vector<64x64xf32>
    %cst = arith.constant dense<0.000000e+00> : vector<64x256xf32>
    %12 = tpu.matmul %11, %10, %cst {dimension_numbers = #tpu.dot_dimension_numbers<[0], [0], [1], [1], [0, 1, 1, 1], [], []>} : vector<64x64xf32>, vector<64x256xf32>, vector<64x256xf32> -> vector<64x256xf32>
    %c0_4 = arith.constant 0 : index
    %c0_5 = arith.constant 0 : index
    %c0_6 = arith.constant 0 : index
    %13 = vector.load %arg4[%c0_4, %c0_5, %c0_6] : memref<1x64x256xf32, #tpu.memory_space<vmem>>, vector<1x64x256xf32>
    %14 = vector.shape_cast %13 : vector<1x64x256xf32> to vector<64x256xf32>
    %15 = vector.shape_cast %12 : vector<64x256xf32> to vector<1x64x256xf32>
    tpu.vector_store %arg4[%c0_4, %c0_5, %c0_6], %15 {strides = array<i32>} : memref<1x64x256xf32, #tpu.memory_space<vmem>>, vector<1x64x256xf32>,
    return
  }
  func.func @transform_0(%arg0: i32, %arg1: i32) -> (i32, i32) {
    %c0_i32 = arith.constant 0 : i32
    %c0_i32_0 = arith.constant 0 : i32
    %c0_i32_1 = arith.constant 0 : i32
    return %c0_i32, %c0_i32_0 : i32, i32
  }
  func.func @transform_1(%arg0: i32, %arg1: i32) -> (i32, i32) {
    %c0_i32 = arith.constant 0 : i32
    %c0_i32_0 = arith.constant 0 : i32
    %c0_i32_1 = arith.constant 0 : i32
    return %c0_i32, %c0_i32_0 : i32, i32
  }
  func.func @transform_2(%arg0: i32, %arg1: i32) -> (i32, i32, i32) {
    %c0_i32 = arith.constant 0 : i32
    %c0_i32_0 = arith.constant 0 : i32
    return %arg0, %c0_i32, %arg1 : i32, i32, i32
  }
}

</mosaic_0001>

<bundles_post_ra>
// kernel: tpu_custom_call.1
= control target key start
LH: loop header
LB: loop body
LE: loop exit
PB: predicated region body
PF: predicated region fallthrough
CT: control target
= control target key end

     0   :  { %7 = vsyncpa [#allocation3], 0  ;;  %s886_s0 = inlined_call_operand.vmem [shape: s32[64,1], index: 0, kind: input, shape index: {}]   ;;  %s887_s1 = inlined_call_operand.vmem [shape: f32[64,64], index: 1, kind: input, shape index: {}]   ;;  %s888_s2 = inlined_call_operand.hbm [shape: f32[2,64,256], index: 2, kind: output, shape index: {}]  }
   0x1   :  { %9 = vsyncpa [#allocation3 + $0x1], 0  ;;  %s706_s9 = smov 0   ;;  %s708_s10 = smov 0  }
   0x2   :  { %s710_s11 = smov 0   ;;  %s712_s12 = smov 0  }
   0x3   :  { %s714_s13 = smov 0   ;;  %s716_s14 = smov 0  }
   0x4 LB: > { %s468_s15 = sadd.s32 4294967295, %s685_s14   ;;  %s469_s16 = sadd.s32 4294967294, %s685_s14   ;;  %s685_s14 = sphi %s716_s14, %s15_s14   ;;  %s681_s13 = sphi %s714_s13, %s895_s13   ;;  %s677_s12 = sphi %s712_s12, %s894_s12   ;;  %s673_s11 = sphi %s710_s11, %s893_s11   ;;  %s669_s10 = sphi %s708_s10, %s892_s10   ;;  %s665_s9 = sphi %s706_s9, %s891_s9  }
   0x5   : > { %s27_s17 = sadd.s32 1, %s681_s13  ;;  %s78_s18 = sadd.s32 1, %s673_s11 }
   0x6   : > { %p29_p0 = scmp.ge.s32.totalorder %s27_s17, 2  ;;  %p88_p1 = scmp.ne.s32.totalorder %s673_s11, %s669_s10 }
   0x7   : > { %p89_p2 = scmp.eq.s32.totalorder %s468_s15, 1  ;;  %p94_p3 = scmp.ne.s32.totalorder %s669_s10, %s665_s9 }
   0x8   : > { %s897_s17 = smov (%p29_p0, %s27_s17), 0  ;;  %p95_p5 = scmp.eq.s32.totalorder %s469_s16, 1 }
   0x9   : > { %p746_p4 = por %p89_p2, %p88_p1  ;;  %s73_s20 = ssub.s32 %s681_s13, %s897_s17 }
   0xa   : > { %p471_p6 = scmp.ge.s32.totalorder %s685_s14, 1  ;;  %p76_p7 = scmp.eq.s32.totalorder %s73_s20, 0 }
   0xb   : > { %p753_p8 = por %p95_p5, %p94_p3  ;;  %p119_p9 = scmp.lt.s32.totalorder %s685_s14, 3 }
   0xc   : > { %s759_s22 = scalar_select %p76_p7, %s673_s11, %s78_s18  }
   0xd   : > { %p120_p10 = pnand %p471_p6, %p119_p9 }
   0xe   : > { %s473_s15 = sshll.u32 (!%p120_p10), %s677_s12, 8  ;;  %s133_s16 = sand.u32 (!%p120_p10), 1, %s669_s10  }
   0xf   : > { %123 = sbr.rel (%p120_p10) target bundleno = 415 (0x19f), region = 28  ;;  %s472_s18 = sshll.u32 (!%p120_p10), %s133_s16, 7 }
  0x10   : > { %s829_s20 = scalar_lea.vmem (!%p120_p10), [#allocation2], %s472_s18  ;;  %s527_s23 = sshll.u32 (!%p120_p10), %s677_s12, 7 }
  0x11   : > { %s403_s26 = scalar_lea.hbm (!%p120_p10), %s888_s2, %s527_s23  ;;  %s404_s27 = sshll.u32 (!%p120_p10), %s829_s20, 4  ;;  %s405_s27 = int_to_ptr.vmem [resolvable:$true] %s404_s27 }
  0x12   : > { %s406_s28 = sshll.u32 (!%p120_p10), %s403_s26, 4  ;;  %s390_s29 = scalar_lea.sflag (!%p120_p10), [#allocation3], %s133_s16  ;;  %s407_s28 = int_to_ptr.hbm [resolvable:$true] %s406_s28 }
  0x13   : > { %s621_s12 = sshra.s32 (!%p120_p10), %s407_s28, 4  ;;  %s627_s5 = scalar_lea.hbm (!%p120_p10), %s888_s2, 256  ;;  %s622_s12 = int_to_ptr.hbm [resolvable:$true] %s621_s12 }
  0x14   : > { %v153_v0 = vld [vmem:[%s886_s0 + $0x38] sm:$0xff]  ;;  %v687_v2 = vmov 0   ;;  %v151_v3 = vld [vmem:[%s886_s0 + $0x28] sm:$0xff]  ;;  %v152_v4 = vld [vmem:[%s886_s0 + $0x30] sm:$0xff]  ;;  %v140_v17 = vlaneseq  ;;  %v143_v20 = vstv %s473_s15  ;;  %v688_v25 = vmov 1.0   ;;  %s623_s30 = scalar_lea.hbm %s622_s12, 128  ;;  %p628_p0 = scmp.lt.s32.totalorder %s622_s12, %s888_s2 }
  0x15   : > { %v149_v1 = vld [vmem:[%s886_s0 + $0x18] sm:$0xff]  ;;  %606 = vset.pattern.permute.xlu2 %v687_v2  ;;  %604 = vset.pattern.permute.xlu0 %v687_v2  ;;  %v148_v5 = vld [vmem:[%s886_s0 + $0x10] sm:$0xff]  ;;  %v150_v6 = vld [vmem:[%s886_s0 + $0x20] sm:$0xff]  ;;  %p624_p11 = scmp.ne.s32.totalorder %s622_s12, %s623_s30  ;;  %p629_p1 = scmp.lt.s32.totalorder %s627_s5, %s623_s30 }
  0x16   : > { %176 = vperm.xlu0 %604, %v153_v0   ;;  %164 = vperm.xlu2 %606, %v149_v1   ;;  %v226_v7 = vld [vmem:[%s887_s1] sm:$0xff]  ;;  %v147_v8 = vld [vmem:[%s886_s0 + $0x8] sm:$0xff]  ;;  %v228_v11 = vld [vmem:[%s887_s1 + $0x10] sm:$0xff]  ;;  %v141_v18 = vand.u32 127, %v140_v17 }
  0x17   : > { %605 = vset.pattern.permute.xlu1 %v687_v2  ;;  %v146_v9 = vld [vmem:[%s886_s0] sm:$0xff]  ;;  %v227_v10 = vld [vmem:[%s887_s1 + $0x8] sm:$0xff]  ;;  %v229_v12 = vld [vmem:[%s887_s1 + $0x18] sm:$0xff]  ;;  %p625_p12 = pnand %p624_p11, %p746_p4  ;;  %p630_p2 = por %p629_p1, %p628_p0 }
  0x18   : > { %170 = vperm.xlu1 %605, %v151_v3   ;;  %v230_v13 = vld [vmem:[%s887_s1 + $0x20] sm:$0xff]  ;;  %v231_v14 = vld [vmem:[%s887_s1 + $0x28] sm:$0xff]  ;;  %v232_v15 = vld [vmem:[%s887_s1 + $0x30] sm:$0xff]  ;;  %v142_v19 = vadd.s32 128, %v141_v18  ;;  %v144_v21 = vadd.s32 %v143_v20, %v141_v18 }
  0x19   : > { %v233_v16 = vld [vmem:[%s887_s1 + $0x38] sm:$0xff]  ;;  %p626_p13 = pneg %p625_p12 }
  0x1a   : > { %v145_v22 = vadd.s32 %v143_v20, %v142_v19 }
  0x1b   : > { %p631_p3 = pnand %p630_p2, %p626_p13 }
  0x1e   : > { %173 = vperm.xlu0 %604, %v152_v4   ;;  %161 = vperm.xlu2 %606, %v148_v5  }
  0x20   : > { %167 = vperm.xlu1 %605, %v150_v6  }
  0x26   : > { %158 = vperm.xlu0 %604, %v147_v8  }
  0x28   : > { %155 = vperm.xlu1 %605, %v146_v9  }
  0x44   : > { %234 = vxpose.xlu2.b32.start [1/8] (short) (narrow) %v226_v7, 64 }
  0x4c   : > { %235 = vxpose.xlu2.b32.cont [2/8] (short) (narrow) %v227_v10, 64 }
  0x54   : > { %236 = vxpose.xlu2.b32.cont [3/8] (short) (narrow) %v228_v11, 64 }
  0x5c   : > { %237 = vxpose.xlu2.b32.cont [4/8] (short) (narrow) %v229_v12, 64 }
  0x64   : > { %238 = vxpose.xlu2.b32.cont [5/8] (short) (narrow) %v230_v13, 64 }
  0x6c   : > { %239 = vxpose.xlu2.b32.cont [6/8] (short) (narrow) %v231_v14, 64 }
  0x70   : > { %v165_v26 = vpop.permute.xlu2 %164 }
  0x71   : > { %vm184_vm8 = vcmp.eq.s32.totalorder %v165_v26, %v144_v21  ;;  %vm185_vm9 = vcmp.eq.s32.totalorder %v165_v26, %v145_v22 }
  0x74   : > { %240 = vxpose.xlu2.b32.cont [7/8] (short) (narrow) %v232_v15, 64 }
  0x78   : > { %v162_v29 = vpop.permute.xlu2 %161 }
  0x79   : > { %vm182_vm10 = vcmp.eq.s32.totalorder %v162_v29, %v144_v21  ;;  %vm183_vm11 = vcmp.eq.s32.totalorder %v162_v29, %v145_v22 }
  0x7c   : > { %241 = vxpose.xlu2.b32.end [8/8] (short) (narrow) %v233_v16, 64 }
  0x88   : > { %v177_v23 = vpop.permute.xlu0 %176 }
  0x89   : > { %vm192_vm0 = vcmp.eq.s32.totalorder %v177_v23, %v144_v21  ;;  %vm193_vm1 = vcmp.eq.s32.totalorder %v177_v23, %v145_v22 }
  0x8a   : > { %v171_v24 = vpop.permute.xlu1 %170  ;;  %490 = vmatpush.msk.msra.mxu0 %vm192_vm0, %v688_v25  ;;  %528 = vmatpush.msk.msra.mxu2 %vm192_vm0, %v688_v25  ;;  %vm266_vm0 = vcmask 523264  }
  0x8b   : > { %506 = vmatpush.msk.msra.mxu1 %vm193_vm1, %v688_v25  ;;  %536 = vmatpush.msk.msra.mxu3 %vm193_vm1, %v688_v25  ;;  %vm188_vm4 = vcmp.eq.s32.totalorder %v171_v24, %v144_v21  ;;  %vm189_vm5 = vcmp.eq.s32.totalorder %v171_v24, %v145_v22 }
  0x90   : > { %v174_v27 = vpop.permute.xlu0 %173 }
  0x91   : > { %vm190_vm2 = vcmp.eq.s32.totalorder %v174_v27, %v144_v21  ;;  %vm191_vm3 = vcmp.eq.s32.totalorder %v174_v27, %v145_v22 }
  0x92   : > { %491 = vmatpush.msk.msra.mxu0 %vm190_vm2, %v688_v25  ;;  %529 = vmatpush.msk.msra.mxu2 %vm190_vm2, %v688_v25  ;;  %v168_v28 = vpop.permute.xlu1 %167 }
  0x93   : > { %507 = vmatpush.msk.msra.mxu1 %vm191_vm3, %v688_v25  ;;  %537 = vmatpush.msk.msra.mxu3 %vm191_vm3, %v688_v25  ;;  %vm186_vm6 = vcmp.eq.s32.totalorder %v168_v28, %v144_v21  ;;  %vm187_vm7 = vcmp.eq.s32.totalorder %v168_v28, %v145_v22 }
  0x94   : > { %492 = vmatpush.msk.msra.mxu0 %vm188_vm4, %v688_v25  ;;  %530 = vmatpush.msk.msra.mxu2 %vm188_vm4, %v688_v25 }
  0x95   : > { %508 = vmatpush.msk.msra.mxu1 %vm189_vm5, %v688_v25  ;;  %538 = vmatpush.msk.msra.mxu3 %vm189_vm5, %v688_v25 }
  0x96   : > { %493 = vmatpush.msk.msra.mxu0 %vm186_vm6, %v688_v25  ;;  %531 = vmatpush.msk.msra.mxu2 %vm186_vm6, %v688_v25 }
  0x97   : > { %509 = vmatpush.msk.msra.mxu1 %vm187_vm7, %v688_v25  ;;  %539 = vmatpush.msk.msra.mxu3 %vm187_vm7, %v688_v25 }
  0x98   : > { %494 = vmatpush.msk.msra.mxu0 %vm184_vm8, %v688_v25  ;;  %532 = vmatpush.msk.msra.mxu2 %vm184_vm8, %v688_v25  ;;  %v159_v30 = vpop.permute.xlu0 %158 }
  0x99   : > { %510 = vmatpush.msk.msra.mxu1 %vm185_vm9, %v688_v25  ;;  %540 = vmatpush.msk.msra.mxu3 %vm185_vm9, %v688_v25  ;;  %vm180_vm12 = vcmp.eq.s32.totalorder %v159_v30, %v144_v21  ;;  %vm181_vm13 = vcmp.eq.s32.totalorder %v159_v30, %v145_v22 }
  0x9a   : > { %495 = vmatpush.msk.msra.mxu0 %vm182_vm10, %v688_v25  ;;  %533 = vmatpush.msk.msra.mxu2 %vm182_vm10, %v688_v25  ;;  %v156_v31 = vpop.permute.xlu1 %155 }
  0x9b   : > { %511 = vmatpush.msk.msra.mxu1 %vm183_vm11, %v688_v25  ;;  %541 = vmatpush.msk.msra.mxu3 %vm183_vm11, %v688_v25  ;;  %vm178_vm14 = vcmp.eq.s32.totalorder %v156_v31, %v144_v21  ;;  %vm179_vm15 = vcmp.eq.s32.totalorder %v156_v31, %v145_v22 }
  0x9c   : > { %496 = vmatpush.msk.msra.mxu0 %vm180_vm12, %v688_v25  ;;  %534 = vmatpush.msk.msra.mxu2 %vm180_vm12, %v688_v25 }
  0x9d   : > { %512 = vmatpush.msk.msra.mxu1 %vm181_vm13, %v688_v25  ;;  %542 = vmatpush.msk.msra.mxu3 %vm181_vm13, %v688_v25 }
  0x9e   : > { %497 = vmatpush.msk.msra.mxu0 %vm178_vm14, %v688_v25  ;;  %535 = vmatpush.msk.msra.mxu2 %vm178_vm14, %v688_v25 }
  0x9f   : > { %513 = vmatpush.msk.msra.mxu1 %vm179_vm15, %v688_v25  ;;  %543 = vmatpush.msk.msra.mxu3 %vm179_vm15, %v688_v25 }
  0xdd   : > { %v250_v32 = vpop.trf.xlu2 }
  0xde   : > { %498 = vmatmul.msk.f32.vlgmr.msra.gmra.mxu0 %vm266_vm0, %v250_v32  ;;  %514 = vmatmul.msk.f32.vlgmr.msra.gmra.mxu1 %vm266_vm0, %v250_v32 }
  0xe5   : > { %v251_v33 = vpop.trf.xlu2 }
  0xe6   : > { %499 = vmatmul.msk.f32.gmra.mxu0 %vm266_vm0, %v251_v33  ;;  %515 = vmatmul.msk.f32.gmra.mxu1 %vm266_vm0, %v251_v33 }
  0xed   : > { %v252_v34 = vpop.trf.xlu2 }
  0xee   : > { %500 = vmatmul.msk.f32.gmra.mxu0 %vm266_vm0, %v252_v34  ;;  %516 = vmatmul.msk.f32.gmra.mxu1 %vm266_vm0, %v252_v34 }
  0xf5   : > { %v253_v35 = vpop.trf.xlu2 }
  0xf6   : > { %501 = vmatmul.msk.f32.gmra.mxu0 %vm266_vm0, %v253_v35  ;;  %517 = vmatmul.msk.f32.gmra.mxu1 %vm266_vm0, %v253_v35 }
  0xfd   : > { %v254_v36 = vpop.trf.xlu2 }
  0xfe   : > { %502 = vmatmul.msk.f32.vlgmr.msra.gmra.mxu2 %vm266_vm0, %v254_v36  ;;  %518 = vmatmul.msk.f32.vlgmr.msra.gmra.mxu3 %vm266_vm0, %v254_v36 }
 0x105   : > { %v255_v37 = vpop.trf.xlu2 }
 0x106   : > { %503 = vmatmul.msk.f32.gmra.mxu2 %vm266_vm0, %v255_v37  ;;  %519 = vmatmul.msk.f32.gmra.mxu3 %vm266_vm0, %v255_v37 }
 0x10d   : > { %v256_v38 = vpop.trf.xlu2 }
 0x10e   : > { %504 = vmatmul.msk.f32.gmra.mxu2 %vm266_vm0, %v256_v38  ;;  %520 = vmatmul.msk.f32.gmra.mxu3 %vm266_vm0, %v256_v38 }
 0x115   : > { %v257_v39 = vpop.trf.xlu2 }
 0x116   : > { %505 = vmatmul.msk.f32.gmra.mxu2 %vm266_vm0, %v257_v39  ;;  %521 = vmatmul.msk.f32.gmra.mxu3 %vm266_vm0, %v257_v39 }
 0x15b   : > { %v308_v40 = vpop.f32.mrf.mxu0  ;;  %v349_v41 = vpop.f32.mrf.mxu1 }
 0x15c   : > { %373 = vst [vmem:[%s829_s20] sm:$0xff] %v308_v40 }
 0x15d   : > { %374 = vst [vmem:[%s829_s20 + $0x8] sm:$0xff] %v349_v41 }
 0x163   : > { %v311_v42 = vpop.f32.mrf.mxu0  ;;  %v352_v43 = vpop.f32.mrf.mxu1 }
 0x164   : > { %375 = vst [vmem:[%s829_s20 + $0x10] sm:$0xff] %v311_v42 }
 0x165   : > { %376 = vst [vmem:[%s829_s20 + $0x18] sm:$0xff] %v352_v43 }
 0x16b   : > { %v314_v44 = vpop.f32.mrf.mxu0  ;;  %v355_v45 = vpop.f32.mrf.mxu1 }
 0x16c   : > { %377 = vst [vmem:[%s829_s20 + $0x20] sm:$0xff] %v314_v44 }
 0x16d   : > { %378 = vst [vmem:[%s829_s20 + $0x28] sm:$0xff] %v355_v45 }
 0x173   : > { %v317_v46 = vpop.f32.mrf.mxu0  ;;  %v358_v47 = vpop.f32.mrf.mxu1 }
 0x174   : > { %379 = vst [vmem:[%s829_s20 + $0x30] sm:$0xff] %v317_v46 }
 0x175   : > { %380 = vst [vmem:[%s829_s20 + $0x38] sm:$0xff] %v358_v47 }
 0x181   : > { %v320_v48 = vpop.f32.mrf.mxu2  ;;  %v361_v49 = vpop.f32.mrf.mxu3 }
 0x182   : > { %381 = vst [vmem:[%s829_s20 + $0x40] sm:$0xff] %v320_v48 }
 0x183   : > { %382 = vst [vmem:[%s829_s20 + $0x48] sm:$0xff] %v361_v49 }
 0x189   : > { %v323_v50 = vpop.f32.mrf.mxu2  ;;  %v364_v51 = vpop.f32.mrf.mxu3 }
 0x18a   : > { %383 = vst [vmem:[%s829_s20 + $0x50] sm:$0xff] %v323_v50 }
 0x18b   : > { %384 = vst [vmem:[%s829_s20 + $0x58] sm:$0xff] %v364_v51 }
 0x191   : > { %v326_v52 = vpop.f32.mrf.mxu2  ;;  %v367_v53 = vpop.f32.mrf.mxu3 }
 0x192   : > { %385 = vst [vmem:[%s829_s20 + $0x60] sm:$0xff] %v326_v52 }
 0x193   : > { %386 = vst [vmem:[%s829_s20 + $0x68] sm:$0xff] %v367_v53 }
 0x199   : > { %v329_v54 = vpop.f32.mrf.mxu2  ;;  %v370_v55 = vpop.f32.mrf.mxu3 }
 0x19a   : > { %387 = vst [vmem:[%s829_s20 + $0x70] sm:$0xff] %v329_v54 }
 0x19b   : > { %388 = vst [vmem:[%s829_s20 + $0x78] sm:$0xff] %v370_v55 }
 0x19c   : > { %634 = shalt.err (!%p631_p3)
}
 0x19d   : > { %s689_s8 = smov 256   ;;  %s690_s15 = smov 16  }
 0x19e   : > { %544 = dma.vmem_to_hbm [thread:$0]  (%p746_p4), %s405_s27, 2048, %s407_s28, %s390_s29, %s689_s8, %s689_s8, %s690_s15  }
 0x19f PF: > { %p550_p5 = scmp.ge.s32.totalorder %s685_s14, 2  ;;  %s421_s16 = sand.u32 1, %s665_s9  }
 0x1a0   : > { %s422_s18 = scalar_lea.sflag [#allocation3], %s421_s16 }
 0x1a1   : > { %p547_p6 = pnand %p550_p5, %p753_p8 }
 0x1a3   : > { %p548_p7 = pneg %p547_p6 }
 0x1a5   : > { %660 = dma.done.wait (%p548_p7), %s422_s18, 2048  }
 0x1a6   : > { %662 = vsyncadd (%p548_p7), %s422_s18, 4294965248  ;;  %s15_s14 = sadd.s32 1, %s685_s14   ;;  %s891_s9 = smov %s669_s10 }
 0x1a7   : > { %p12_p9 = scmp.ge.s32.totalorder %s15_s14, 4   ;;  %s892_s10 = smov %s673_s11 }
 0x1a8   : > { %s893_s11 = smov %s759_s22  ;;  %s894_s12 = smov %s681_s13 }
 0x1a9   : > { %s895_s13 = smov %s897_s17  ;;  %14 = sbr.rel (!%p12_p9) target bundleno = 4 (0x4), region = 60 }
 0x1ae   :  { %428 = vsyncpa [#allocation3], 1 }
 0x1af   :  { %430 = vsyncpa [#allocation3 + $0x1], 1 }

</bundles_post_ra>
